<compile_context>
chip_gen: v7x
topology: tpu7x:2x2x1
jax: 0.10.0
libtpu: 0.0.40
codegen_flags: <defaults>
</compile_context>

<pallas_src>
import functools

import jax
import jax.numpy as jnp
from jax import lax
from jax.experimental import pallas as pl
from jax.experimental.pallas import tpu as pltpu


def _spread_loss_kernel(m_ref, target_ref, outT_ref, loss_ref, acc_ref, *,
                        batch, needs_tail_mask):
    # m_ref      : SMEM (1,)     float32 -- margin m
    # target_ref : VMEM (1, TB)  int32   -- class index per batch lane (block)
    # outT_ref   : VMEM (C, TB)  in-dtype-- activations, classes on sublanes,
    #                                       batch on lanes (lane-dense)
    # loss_ref   : SMEM (1, 1)   float32 -- scalar spread loss (written once)
    # acc_ref    : VMEM (1, TB)  float32 -- per-lane running sum across tiles
    i = pl.program_id(0)
    num_classes, tb = outT_ref.shape
    m = m_ref[0]

    @pl.when(i == 0)
    def _():
        acc_ref[...] = jnp.zeros_like(acc_ref)

    out = outT_ref[...].astype(jnp.float32)                   # (C, TB), f32 math
    tgt = target_ref[...]                                     # (1, TB) int32

    cls = lax.broadcasted_iota(jnp.int32, (num_classes, tb), 0)
    is_target = cls == tgt                                    # (C, TB) one-hot

    # per-lane target activation output[b, target[b]] via masked sublane reduce
    target_out = jnp.sum(jnp.where(is_target, out, 0.0), axis=0, keepdims=True)
    thresh = target_out - m                                   # fold +m on (1,TB)

    margin = jnp.maximum(out - thresh, 0.0)                   # clamp(min=0)
    sq = jnp.where(is_target, 0.0, margin * margin)           # zero target class
    row = jnp.sum(sq, axis=0, keepdims=True)                  # (1, TB) sublane sum

    if needs_tail_mask:
        # Only built when batch % tb != 0; applied on the cheap (1, TB) row.
        lane = lax.broadcasted_iota(jnp.int32, (1, tb), 1)
        valid = (i * tb + lane) < batch
        row = jnp.where(valid, row, 0.0)                      # select, not multiply

    acc_ref[...] += row

    @pl.when(i == pl.num_programs(0) - 1)
    def _():
        loss_ref[0, 0] = jnp.sum(acc_ref[...]) * jnp.float32(1.0 / batch)


class SpreadLoss:
    """JAX/Pallas port of layers/cap_layer.py::SpreadLoss (forward only)."""

    def __init__(self, max_epoch, num_classes, m_low=0.2, m_high=0.9,
                 margin_epoch=20, fix_m=False, max_batch_tile=32768):
        assert max_batch_tile % 128 == 0
        self.num_classes = num_classes
        self.total_epoch = max_epoch
        self.m_low = m_low
        self.m_high = m_high
        self.margin_epoch = margin_epoch
        self.interval = (m_high - m_low) / (self.total_epoch - 2 * margin_epoch)
        self.fix_m = fix_m
        self.max_batch_tile = max_batch_tile

    def _margin(self, epoch):
        # Same python-scalar control flow as the PyTorch module.
        if self.fix_m:
            return self.m_high
        elif epoch < self.margin_epoch:
            return self.m_low
        elif epoch >= self.total_epoch - self.margin_epoch:
            return self.m_high
        else:
            return self.m_low + self.interval * (epoch - self.margin_epoch)

    def __call__(self, output, target, epoch, *, classes_first=False):
        # classes_first=True: `output` is already (num_classes, batch); avoids
        # the wrapper transpose (an extra HBM round trip).
        if classes_first:
            num_classes, bs = output.shape
            outT = output
        else:
            bs, num_classes = output.shape
            outT = jnp.transpose(output)                       # (C, B) lane-dense
        assert num_classes == self.num_classes
        m = self._margin(int(epoch))

        tgt = target.astype(jnp.int32).reshape(1, bs)          # (1, B)
        m_arr = jnp.full((1,), m, dtype=jnp.float32)

        # Batch tiling: single full-extent block when it fits; otherwise large
        # 128-aligned tiles with a (possibly partial) last block and no padding.
        tb = bs if bs <= self.max_batch_tile else self.max_batch_tile
        grid = (pl.cdiv(bs, tb),)
        needs_tail_mask = (bs % tb) != 0

        kernel = functools.partial(_spread_loss_kernel, batch=bs,
                                   needs_tail_mask=needs_tail_mask)

        itemsize = jnp.dtype(output.dtype).itemsize
        cost = pl.CostEstimate(
            flops=7 * bs * num_classes,
            transcendentals=0,
            bytes_accessed=bs * num_classes * itemsize + bs * 4 + 8,
        )

        loss = pl.pallas_call(
            kernel,
            out_shape=jax.ShapeDtypeStruct((1, 1), jnp.float32),
            grid=grid,
            in_specs=[
                pl.BlockSpec(memory_space=pltpu.SMEM),                  # m
                pl.BlockSpec((1, tb), lambda i: (0, i)),                # target
                pl.BlockSpec((num_classes, tb), lambda i: (0, i)),      # outT
            ],
            out_specs=pl.BlockSpec(memory_space=pltpu.SMEM),            # scalar
            scratch_shapes=[pltpu.VMEM((1, tb), jnp.float32)],          # row acc
            compiler_params=pltpu.CompilerParams(
                dimension_semantics=("arbitrary",)),
            cost_estimate=cost,
        )(m_arr, tgt, outT)
        return loss[0, 0]


def _reference_spread_loss(output, target, m):
    bs, num_classes = output.shape
    out = output.astype(jnp.float32)
    target_out = out[jnp.arange(bs), target][:, None]
    gt = jax.nn.one_hot(target, num_classes, dtype=jnp.float32)
    loss = (out - target_out + m) * (1.0 - gt)
    loss = jnp.maximum(loss, 0.0) ** 2
    return loss.sum() / bs


def _check(criterion, output, target, epoch, **kw):
    loss = criterion(output, target, epoch, **kw)
    loss = jax.block_until_ready(loss)
    out_bc = output.T if kw.get("classes_first", False) else output
    ref = _reference_spread_loss(out_bc, target, criterion._margin(epoch))
    err = abs(float(loss) - float(ref))
    tol = 1e-4 * max(1.0, abs(float(ref)))
    assert err < tol, (float(loss), float(ref), err)


if __name__ == "__main__":
    key = jax.random.PRNGKey(0)
    k1, k2, k3, k4, k5, k6 = jax.random.split(key, 6)

    num_classes = 10
    max_epoch = 60

    # Case 1: small batch (8), single full-extent block, linear-ramp margin.
    batch = 8
    output = jax.random.normal(k1, (batch, num_classes), dtype=jnp.float32)
    target = jax.random.randint(k2, (batch,), 0, num_classes, dtype=jnp.int32)
    criterion = SpreadLoss(max_epoch=max_epoch, num_classes=num_classes)
    _check(criterion, output, target, epoch=25)

    # Case 2: batch not a multiple of the (forced small) tile -> multi-step
    # grid, running VMEM accumulator, partial last block masked in-kernel
    # (no wrapper padding), m_high branch.
    batch2 = 300
    output2 = jax.random.normal(k3, (batch2, num_classes), dtype=jnp.float32)
    target2 = jax.random.randint(k4, (batch2,), 0, num_classes, dtype=jnp.int32)
    criterion2 = SpreadLoss(max_epoch=max_epoch, num_classes=num_classes,
                            max_batch_tile=128)
    _check(criterion2, output2, target2, epoch=50)

    # Case 3: producer already emits (num_classes, batch) -> no wrapper
    # transpose; m_low branch.
    batch3 = 260
    output3_cf = jax.random.normal(k5, (num_classes, batch3), dtype=jnp.float32)
    target3 = jax.random.randint(k6, (batch3,), 0, num_classes, dtype=jnp.int32)
    criterion3 = SpreadLoss(max_epoch=max_epoch, num_classes=num_classes)
    _check(criterion3, output3_cf, target3, epoch=5, classes_first=True)

    print("KERNEL_OK")
</pallas_src>

<mosaic_0001>
module attributes {stable_mosaic.version = 11 : i64} {
  func.func @_spread_loss_kernel(%arg0: i32, %arg1: memref<1xf32, #tpu.memory_space<smem>>, %arg2: memref<1x8xi32, #tpu.memory_space<vmem>>, %arg3: memref<10x8xf32, #tpu.memory_space<vmem>>, %arg4: memref<1x1xf32, #tpu.memory_space<smem>>, %arg5: memref<1x8xf32, #tpu.memory_space<vmem>>) attributes {dimension_semantics = [#tpu.dimension_semantics<arbitrary>], iteration_bounds = array<i64: 1>, scalar_prefetch = 0 : i64, scratch_operands = 1 : i64, tpu.core_type = #tpu.core_type<tc>, window_params = [{transform_indices = @transform_0, window_bounds = array<i64: 1>}, {transform_indices = @transform_1, window_bounds = array<i64: 1, 8>}, {transform_indices = @transform_2, window_bounds = array<i64: 10, 8>}, {transform_indices = @transform_3, window_bounds = array<i64: 1, 1>}]} {
    %c0 = arith.constant 0 : index
    %0 = memref.load %arg1[%c0] : memref<1xf32, #tpu.memory_space<smem>>
    %c0_i32 = arith.constant 0 : i32
    %1 = arith.cmpi eq, %arg0, %c0_i32 : i32
    %2 = arith.extui %1 : i1 to i32
    %c0_i32_0 = arith.constant 0 : i32
    %3 = arith.cmpi ne, %2, %c0_i32_0 : i32
    scf.if %3 {
      %cst_15 = arith.constant 0.000000e+00 : f32
      %30 = vector.broadcast %cst_15 : f32 to vector<1x8xf32>
      %c0_16 = arith.constant 0 : index
      %c0_17 = arith.constant 0 : index
      %31 = vector.load %arg5[%c0_16, %c0_17] : memref<1x8xf32, #tpu.memory_space<vmem>>, vector<1x8xf32>
      tpu.vector_store %arg5[%c0_16, %c0_17], %30 {strides = array<i32>} : memref<1x8xf32, #tpu.memory_space<vmem>>, vector<1x8xf32>,
    } else {
    }
    %c0_1 = arith.constant 0 : index
    %c0_2 = arith.constant 0 : index
    %4 = vector.load %arg3[%c0_1, %c0_2] : memref<10x8xf32, #tpu.memory_space<vmem>>, vector<10x8xf32>
    %c0_3 = arith.constant 0 : index
    %c0_4 = arith.constant 0 : index
    %5 = vector.load %arg2[%c0_3, %c0_4] : memref<1x8xi32, #tpu.memory_space<vmem>>, vector<1x8xi32>
    %6 = tpu.iota {dimensions = array<i32: 0>} : vector<10x8xi32>
    %7 = vector.broadcast %5 : vector<1x8xi32> to vector<10x8xi32>
    %8 = arith.cmpi eq, %6, %7 : vector<10x8xi32>
    %cst = arith.constant 0.000000e+00 : f32
    %9 = vector.broadcast %cst : f32 to vector<10x8xf32>
    %10 = arith.select %8, %4, %9 : vector<10x8xi1>, vector<10x8xf32>
    %cst_5 = arith.constant dense<0.000000e+00> : vector<8xf32>
    %11 = vector.multi_reduction <add>, %10, %cst_5 [0] : vector<10x8xf32> to vector<8xf32>
    %12 = vector.shape_cast %11 : vector<8xf32> to vector<1x8xf32>
    %13 = vector.broadcast %0 : f32 to vector<1x8xf32>
    %14 = arith.subf %12, %13 : vector<1x8xf32>
    %15 = vector.broadcast %14 : vector<1x8xf32> to vector<10x8xf32>
    %16 = arith.subf %4, %15 : vector<10x8xf32>
    %cst_6 = arith.constant 0.000000e+00 : f32
    %17 = vector.broadcast %cst_6 : f32 to vector<10x8xf32>
    %18 = arith.maximumf %16, %17 : vector<10x8xf32>
    %19 = arith.mulf %18, %18 : vector<10x8xf32>
    %cst_7 = arith.constant 0.000000e+00 : f32
    %20 = vector.broadcast %cst_7 : f32 to vector<10x8xf32>
    %21 = arith.select %8, %20, %19 : vector<10x8xi1>, vector<10x8xf32>
    %cst_8 = arith.constant dense<0.000000e+00> : vector<8xf32>
    %22 = vector.multi_reduction <add>, %21, %cst_8 [0] : vector<10x8xf32> to vector<8xf32>
    %23 = vector.shape_cast %22 : vector<8xf32> to vector<1x8xf32>
    %c0_9 = arith.constant 0 : index
    %c0_10 = arith.constant 0 : index
    %24 = vector.load %arg5[%c0_9, %c0_10] : memref<1x8xf32, #tpu.memory_space<vmem>>, vector<1x8xf32>
    %25 = arith.addf %24, %23 : vector<1x8xf32>
    %c0_11 = arith.constant 0 : index
    %c0_12 = arith.constant 0 : index
    %26 = vector.load %arg5[%c0_11, %c0_12] : memref<1x8xf32, #tpu.memory_space<vmem>>, vector<1x8xf32>
    tpu.vector_store %arg5[%c0_11, %c0_12], %25 {strides = array<i32>} : memref<1x8xf32, #tpu.memory_space<vmem>>, vector<1x8xf32>,
    %c0_i32_13 = arith.constant 0 : i32
    %27 = arith.cmpi eq, %arg0, %c0_i32_13 : i32
    %28 = arith.extui %27 : i1 to i32
    %c0_i32_14 = arith.constant 0 : i32
    %29 = arith.cmpi ne, %28, %c0_i32_14 : i32
    scf.if %29 {
      %c0_15 = arith.constant 0 : index
      %c0_16 = arith.constant 0 : index
      %30 = vector.load %arg5[%c0_15, %c0_16] : memref<1x8xf32, #tpu.memory_space<vmem>>, vector<1x8xf32>
      %31 = vector.shape_cast %30 : vector<1x8xf32> to vector<1x1x8xf32>
      %cst_17 = arith.constant dense<0.000000e+00> : vector<1xf32>
      %32 = vector.multi_reduction <add>, %31, %cst_17 [1, 2] : vector<1x1x8xf32> to vector<1xf32>
      %33 = vector.shape_cast %32 : vector<1xf32> to vector<1x1x1xf32>
      %34 = vector.extract %33[0, 0, 0] : f32 from vector<1x1x1xf32>
      %cst_18 = arith.constant 1.250000e-01 : f32
      %35 = arith.mulf %34, %cst_18 : f32
      %c0_19 = arith.constant 0 : index
      %c0_20 = arith.constant 0 : index
      %36 = memref.load %arg4[%c0_19, %c0_20] : memref<1x1xf32, #tpu.memory_space<smem>>
      memref.store %35, %arg4[%c0_19, %c0_20] : memref<1x1xf32, #tpu.memory_space<smem>>
    } else {
    }
    return
  }
  func.func @transform_0(%arg0: i32) -> i32 {
    %c0_i32 = arith.constant 0 : i32
    %c0_i32_0 = arith.constant 0 : i32
    return %c0_i32 : i32
  }
  func.func @transform_1(%arg0: i32) -> (i32, i32) {
    %c0_i32 = arith.constant 0 : i32
    %c0_i32_0 = arith.constant 0 : i32
    return %c0_i32, %arg0 : i32, i32
  }
  func.func @transform_2(%arg0: i32) -> (i32, i32) {
    %c0_i32 = arith.constant 0 : i32
    %c0_i32_0 = arith.constant 0 : i32
    return %c0_i32, %arg0 : i32, i32
  }
  func.func @transform_3(%arg0: i32) -> (i32, i32) {
    %c0_i32 = arith.constant 0 : i32
    %c0_i32_0 = arith.constant 0 : i32
    %c0_i32_1 = arith.constant 0 : i32
    return %c0_i32, %c0_i32_0 : i32, i32
  }
}

</mosaic_0001>

<bundles_post_ra>
// kernel: tpu_custom_call.1
= control target key start
LH: loop header
LB: loop body
LE: loop exit
PB: predicated region body
PF: predicated region fallthrough
CT: control target
= control target key end

     0   :  { %vm21_vm0 = vcmask 57344   ;;  %v26_v0 = vlaneseq  ;;  %v118_v1 = vmov 0.0   ;;  %s175_s0 = inlined_call_operand.<no memory space> [shape: f32[1], index: 0, kind: input, shape index: {}]   ;;  %s176_s1 = inlined_call_operand.vmem [shape: s32[1,8], index: 1, kind: input, shape index: {}]   ;;  %s177_s2 = inlined_call_operand.vmem [shape: f32[10,8], index: 2, kind: input, shape index: {}]   ;;  %s178_s3 = inlined_call_operand.hbm [shape: f32[1,1], index: 3, kind: output, shape index: {}]  }
   0x1   :  { %22 = vst.msk [vmem:[#allocation2] sm:$0x1] %vm21_vm0, %v118_v1  ;;  %v101_v2 = vld [vmem:[%s176_s1] ss:$0 sm:$0xff] }
   0x2   :  { %9 = vsyncpa [#allocation5], 0  ;;  %v23_v3 = vld [vmem:[%s177_s2] sm:$0xff]  ;;  %v27_v4 = vshrl.u32 %v26_v0, 7  ;;  %vm37_vm1 = vcmask 64512   ;;  %vm39_vm3 = vcmask 58368   ;;  %v48_v17 = vstv %s175_s0 }
   0x3   :  { %v24_v5 = vld [vmem:[%s177_s2 + $0x8] sm:$0x3]  ;;  %s106_s21 = scalar_lea.hbm %s178_s3, 16 }
   0x4   :  { %v28_v6 = vadd.s32 8, %v27_v4  ;;  %vm33_vm2 = vcmp.eq.s32.totalorder %v27_v4, %v101_v2  ;;  %p107_p0 = scmp.ne.s32.totalorder %s178_s3, %s106_s21  ;;  %p110_p1 = scmp.lt.u32.totalorder %s106_s21, %s178_s3 }
   0x5   :  { %v35_v7 = vsel %vm33_vm2, %v23_v3, 0.0 }
   0x6   :  { %vm34_vm4 = vcmp.eq.s32.totalorder %v28_v6, %v101_v2  ;;  %v38_v8 = vsel %vm37_vm1, %v35_v7, 0.0  ;;  %p112_p2 = pnand %p110_p1, %p107_p0 }
   0x7   :  { %v36_v9 = vsel %vm34_vm4, %v24_v5, 0.0 }
   0x8   :  { %v40_v10 = vsel %vm39_vm3, %v36_v9, 0.0  ;;  %v67_v36 = vld [vmem:[#allocation2] sm:$0x1] }
   0x9   :  { %v41_v11 = vadd.f32 %v40_v10, %v38_v8 }
   0xb   :  { %v42_v12 = vrot.slane %v41_v11, 4 }
   0xd   :  { %v43_v13 = vadd.f32 %v42_v12, %v41_v11 }
   0xf   :  { %v44_v14 = vrot.slane %v43_v13, 2 }
  0x11   :  { %v45_v15 = vadd.f32 %v44_v14, %v43_v13 }
  0x13   :  { %v46_v16 = vrot.slane %v45_v15, 1 }
  0x15   :  { %v47_v18 = vadd.f32 %v46_v16, %v45_v15 }
  0x17   :  { %v49_v19 = vsub.f32 %v47_v18, %v48_v17 }
  0x19   :  { %v50_v20 = vsub.f32 %v23_v3, %v49_v19  ;;  %v51_v21 = vsub.f32 %v24_v5, %v49_v19 }
  0x1b   :  { %v52_v22 = vmax.f32 %v50_v20, 0.0  ;;  %v53_v23 = vmax.f32 %v51_v21, 0.0 }
  0x1d   :  { %v54_v24 = vmul.f32 %v52_v22, %v52_v22  ;;  %v55_v25 = vmul.f32 %v53_v23, %v53_v23 }
  0x1f   :  { %v56_v26 = vsel %vm33_vm2, 0.0, %v54_v24  ;;  %v57_v27 = vsel %vm34_vm4, 0.0, %v55_v25 }
  0x20   :  { %v58_v28 = vsel %vm37_vm1, %v56_v26, 0.0  ;;  %v59_v29 = vsel %vm39_vm3, %v57_v27, 0.0 }
  0x21   :  { %v60_v30 = vadd.f32 %v59_v29, %v58_v28 }
  0x23   :  { %v61_v31 = vrot.slane %v60_v30, 4 }
  0x25   :  { %v62_v32 = vadd.f32 %v61_v31, %v60_v30 }
  0x27   :  { %v63_v33 = vrot.slane %v62_v32, 2 }
  0x29   :  { %v64_v34 = vadd.f32 %v63_v33, %v62_v32 }
  0x2b   :  { %v65_v35 = vrot.slane %v64_v34, 1 }
  0x2d   :  { %v66_v37 = vadd.f32 %v65_v35, %v64_v34 }
  0x2f   :  { %v68_v38 = vadd.f32 %v67_v36, %v66_v37 }
  0x31   :  { %70 = vst.msk [vmem:[#allocation2] sm:$0x1] %vm21_vm0, %v68_v38 }
  0x38   :  { %v74_v39 = vld [vmem:[#allocation2] sm:$0x1] }
  0x39   :  { %v75_v40 = vsel %vm21_vm0, %v74_v39, 0.0 }
  0x3a   :  { %76 = vadd.xlane.f32.xlu0 %v75_v40 }
  0xc7   :  { %v77_v41 = vpop.xlane.xlu0 %76 }
  0xc8   :  { %v78_v42 = vrot.slane %v77_v41, 4 }
  0xca   :  { %v79_v43 = vadd.f32 %v78_v42, %v77_v41 }
  0xcc   :  { %v80_v44 = vrot.slane %v79_v43, 2 }
  0xce   :  { %v81_v45 = vadd.f32 %v80_v44, %v79_v43 }
  0xd0   :  { %v82_v46 = vrot.slane %v81_v45, 1 }
  0xd2   :  { %v83_v47 = vadd.f32 %v82_v46, %v81_v45 }
  0xd4   :  { %102 = vpush %v83_v47 }
 0x105   :  { %s103_s0 = spop %102 }
 0x106   :  { %s85_s18 = smul.f32 0.125, %s103_s0 }
 0x108   :  { %87 = sst [smem:[#allocation4]] %s85_s18 }
 0x109   :  { %115 = shalt.err (!%p112_p2)
}
 0x10a   :  { %s119_s26 = smov [#allocation4]  }
 0x10b   :  { %95 = dma.smem_to_hbm %s119_s26, 16, %s178_s3, [#allocation5]  }
 0x10c   :  { %116 = dma.done.wait [#allocation5], 16  }
 0x10d   :  { %117 = vsyncadd [#allocation5], 4294967280 }
 0x10e   :  { %99 = sfence }
 0x10f   :  { %100 = vsyncpa [#allocation5], 1 }

</bundles_post_ra>
